<compile_context>
chip_gen: v7x
topology: tpu7x:2x2x1
jax: 0.10.0
libtpu: 0.0.40
codegen_flags: <defaults>
</compile_context>

<pallas_src>
from functools import partial

import jax
import jax.numpy as jnp
from jax.experimental import pallas as pl
from jax.experimental.pallas import tpu as pltpu

NEG_INF = -1e30
LANE = 128
SUB = 8
MAX_TILE = 2048  # rows per grid step; working set is ~1-2 MiB so this fits all generations


def _cdiv(a, b):
    return -(-a // b)


def _round_up(x, m):
    return _cdiv(x, m) * m


def _pad2d(x, rows, cols, value=0):
    return jnp.pad(x, ((0, rows - x.shape[0]), (0, cols - x.shape[1])),
                   constant_values=value)


def _choose_tiling(n, max_tile):
    """tile size, padded N, #cores to split over, tiles per core."""
    n8 = _round_up(max(n, 1), SUB)
    n_steps = _cdiv(n8, max_tile)
    tile = _round_up(_cdiv(n8, n_steps), SUB)      # avoids ~2x padding for n just over a multiple
    n_tiles = _cdiv(n8, tile)
    cores = 2 if n_tiles >= 2 else 1               # v7x has 2 TCs; no-op split on v5e/v6e
    n_tiles = _round_up(n_tiles, cores)
    n_pad = n_tiles * tile
    return tile, n_pad, cores, n_tiles // cores


# --------------------------- shared blocked segment-max update ------------------------------
def _segment_max_update(out_ref, feats, ids_b, num_cluster_blocks):
    """out_ref: (C_pad, 128) resident accumulator.  feats: (T, 128).  ids_b: (T, 128) int32."""

    @pl.loop(0, num_cluster_blocks)
    def _(cb):
        c0 = pl.multiple_of(cb * SUB, SUB)
        # static unroll over the 8 clusters of this block (co-issues across VALU slots)
        rows = []
        for j in range(SUB):
            m = ids_b == (c0 + j)
            rows.append(jnp.max(jnp.where(m, feats, NEG_INF), axis=0, keepdims=True))
        part = jnp.concatenate(rows, axis=0)                       # (8, 128)
        cur = out_ref[pl.ds(c0, SUB), :]                           # aligned, unmasked
        out_ref[pl.ds(c0, SUB), :] = jnp.maximum(cur, part)        # one RMW per cluster block


# ----------------------------- kernel 1: SimpleRelativeEncoder ------------------------------
def _enc1_kernel(x_ref, cl_ref, w1_ref, b1_ref, w2_ref, b2_ref, w3_ref, b3_ref,
                 out_ref, *, num_cluster_blocks):
    @pl.when(pl.program_id(1) == 0)
    def _():
        out_ref[...] = jnp.full(out_ref.shape, NEG_INF, dtype=out_ref.dtype)

    x = x_ref[...]                                                               # (T, 8)
    h = jnp.dot(x, w1_ref[...], preferred_element_type=jnp.float32) + b1_ref[...]
    h = jnp.maximum(h, 0.0)                                                      # (T, 128)
    h = jnp.dot(h, w2_ref[...], preferred_element_type=jnp.float32) + b2_ref[...]
    h = jnp.maximum(h, 0.0)                                                      # (T, 128)
    h = jnp.dot(h, w3_ref[...], preferred_element_type=jnp.float32) + b3_ref[...]  # (T, 128)

    ids_b = jnp.broadcast_to(cl_ref[...], h.shape)   # hoisted once per tile
    _segment_max_update(out_ref, h, ids_b, num_cluster_blocks)


# ----------------------------- kernel 2: MiddleLayerEncoder ---------------------------------
def _enc2_kernel(x_ref, cl_ref, w1_ref, b1_ref, w2_ref, b2_ref,
                 enc_ref, f2_ref, *, num_cluster_blocks):
    @pl.when(pl.program_id(1) == 0)
    def _():
        enc_ref[...] = jnp.full(enc_ref.shape, NEG_INF, dtype=enc_ref.dtype)

    # x_ref already holds concat([rel2, mapped_feats1], -1) padded to K=8 -> single matmul
    h = jnp.dot(x_ref[...], w1_ref[...], preferred_element_type=jnp.float32) + b1_ref[...]
    h = jnp.maximum(h, 0.0)                                                      # (T, 128)
    feats2 = jnp.dot(h, w2_ref[...], preferred_element_type=jnp.float32) + b2_ref[...]  # (T, 128)

    f2_ref[...] = feats2                                                         # lane-dense store

    ids_b = jnp.broadcast_to(cl_ref[...], feats2.shape)
    _segment_max_update(enc_ref, feats2, ids_b, num_cluster_blocks)


# ----------------------------- wrappers ------------------------------------------------------
def simple_relative_encoder(relative_neighs, cluster, params, num_clusters, max_tile=MAX_TILE):
    n = relative_neighs.shape[0]
    f_out = params["w3"].shape[1]                                   # 5

    tile, n_pad, cores, tiles_per_core = _choose_tiling(n, max_tile)
    c_pad = _round_up(num_clusters, SUB)
    n_cblocks = c_pad // SUB

    # K padded to one sublane group (8); extra cols/rows are zero -> numerically exact
    x = _pad2d(relative_neighs.astype(jnp.float32), n_pad, SUB)
    cl = _pad2d(cluster.reshape(n, 1).astype(jnp.int32), n_pad, 1, value=-1)

    w1 = _pad2d(params["w1"].astype(jnp.float32), SUB, LANE)
    b1 = _pad2d(params["b1"].astype(jnp.float32), 1, LANE)
    w2 = _pad2d(params["w2"].astype(jnp.float32), LANE, LANE)
    b2 = _pad2d(params["b2"].astype(jnp.float32), 1, LANE)
    w3 = _pad2d(params["w3"].astype(jnp.float32), LANE, LANE)
    b3 = _pad2d(params["b3"].astype(jnp.float32), 1, LANE)

    kern = partial(_enc1_kernel, num_cluster_blocks=n_cblocks)
    out = pl.pallas_call(
        kern,
        grid=(cores, tiles_per_core),
        out_shape=jax.ShapeDtypeStruct((cores, c_pad, LANE), jnp.float32),
        in_specs=[
            pl.BlockSpec((tile, SUB), lambda c, i: (c * tiles_per_core + i, 0)),
            pl.BlockSpec((tile, 1), lambda c, i: (c * tiles_per_core + i, 0)),
            pl.BlockSpec((SUB, LANE), lambda c, i: (0, 0)),
            pl.BlockSpec((1, LANE), lambda c, i: (0, 0)),
            pl.BlockSpec((LANE, LANE), lambda c, i: (0, 0)),
            pl.BlockSpec((1, LANE), lambda c, i: (0, 0)),
            pl.BlockSpec((LANE, LANE), lambda c, i: (0, 0)),
            pl.BlockSpec((1, LANE), lambda c, i: (0, 0)),
        ],
        out_specs=pl.BlockSpec((None, c_pad, LANE), lambda c, i: (c, 0, 0)),
        compiler_params=pltpu.CompilerParams(
            dimension_semantics=("parallel", "arbitrary"),
            vmem_limit_bytes=32 * 1024 * 1024),
    )(x, cl, w1, b1, w2, b2, w3, b3)

    out = jnp.max(out, axis=0)                      # combine per-core partial maxima (exact)
    return out[:num_clusters, :f_out]


def middle_layer_encoder(relative_neighs2, mapped_feats1, cluster2, params, num_clusters2,
                         max_tile=MAX_TILE):
    n = relative_neighs2.shape[0]
    din = relative_neighs2.shape[1]                                 # 3
    dmap = mapped_feats1.shape[1]                                   # 5
    f_out = params["w2"].shape[1]                                   # 25
    k = din + dmap
    k_pad = _round_up(k, SUB)                                       # 8

    tile, n_pad, cores, tiles_per_core = _choose_tiling(n, max_tile)
    c_pad = _round_up(num_clusters2, SUB)
    n_cblocks = c_pad // SUB

    # pre-concatenate [rel2, mapped] -> one operand, one DMA stream, one layer-1 matmul
    x = jnp.concatenate([relative_neighs2.astype(jnp.float32),
                         mapped_feats1.astype(jnp.float32)], axis=-1)
    x = _pad2d(x, n_pad, k_pad)
    cl = _pad2d(cluster2.reshape(n, 1).astype(jnp.int32), n_pad, 1, value=-1)

    w1 = jnp.concatenate([params["w1a"].astype(jnp.float32),
                          params["w1b"].astype(jnp.float32)], axis=0)
    w1 = _pad2d(w1, k_pad, LANE)
    b1 = _pad2d(params["b1"].astype(jnp.float32), 1, LANE)
    w2 = _pad2d(params["w2"].astype(jnp.float32), LANE, LANE)
    b2 = _pad2d(params["b2"].astype(jnp.float32), 1, LANE)

    kern = partial(_enc2_kernel, num_cluster_blocks=n_cblocks)
    enc, f2 = pl.pallas_call(
        kern,
        grid=(cores, tiles_per_core),
        out_shape=(jax.ShapeDtypeStruct((cores, c_pad, LANE), jnp.float32),
                   jax.ShapeDtypeStruct((n_pad, LANE), jnp.float32)),
        in_specs=[
            pl.BlockSpec((tile, k_pad), lambda c, i: (c * tiles_per_core + i, 0)),
            pl.BlockSpec((tile, 1), lambda c, i: (c * tiles_per_core + i, 0)),
            pl.BlockSpec((k_pad, LANE), lambda c, i: (0, 0)),
            pl.BlockSpec((1, LANE), lambda c, i: (0, 0)),
            pl.BlockSpec((LANE, LANE), lambda c, i: (0, 0)),
            pl.BlockSpec((1, LANE), lambda c, i: (0, 0)),
        ],
        out_specs=(pl.BlockSpec((None, c_pad, LANE), lambda c, i: (c, 0, 0)),
                   pl.BlockSpec((tile, LANE), lambda c, i: (c * tiles_per_core + i, 0))),
        compiler_params=pltpu.CompilerParams(
            dimension_semantics=("parallel", "arbitrary"),
            vmem_limit_bytes=32 * 1024 * 1024),
    )(x, cl, w1, b1, w2, b2)

    enc = jnp.max(enc, axis=0)
    return enc[:num_clusters2, :f_out], f2[:n, :f_out]


def composed_encoder(relative_neighs, cluster, relative_neighs2, indices2, cluster2,
                     params1, params2, num_clusters1, num_clusters2, max_tile=MAX_TILE):
    feats1 = simple_relative_encoder(relative_neighs, cluster, params1, num_clusters1, max_tile)
    # feats1 is tiny (C1, 5); plain-JAX gather mirrors `feats1[indices2]` in the original forward.
    feats1_mapped = feats1[indices2]
    encoding, feats2 = middle_layer_encoder(relative_neighs2, feats1_mapped, cluster2,
                                            params2, num_clusters2, max_tile)
    return encoding, feats2


# ----------------------------- pure-JAX reference (sanity check) ----------------------------
def _ref_forward(rel1, cl1, rel2, idx2, cl2, p1, p2, c1, c2):
    def seg_max(x, ids, n):
        return jnp.stack([jnp.max(jnp.where((ids == c)[:, None], x, NEG_INF), axis=0)
                          for c in range(n)], axis=0)

    h = jnp.maximum(rel1 @ p1["w1"] + p1["b1"], 0.0)
    h = jnp.maximum(h @ p1["w2"] + p1["b2"], 0.0)
    h = h @ p1["w3"] + p1["b3"]
    feats1 = seg_max(h, cl1, c1)
    mapped = feats1[idx2]
    x = jnp.concatenate([rel2, mapped], axis=-1)
    w1 = jnp.concatenate([p2["w1a"], p2["w1b"]], axis=0)
    h2 = jnp.maximum(x @ w1 + p2["b1"], 0.0)
    feats2 = h2 @ p2["w2"] + p2["b2"]
    encoding = seg_max(feats2, cl2, c2)
    return encoding, feats2


if __name__ == "__main__":
    key = jax.random.PRNGKey(0)
    ks = jax.random.split(key, 16)

    # small shapes
    N1, C1 = 32, 8      # level-1 points / clusters
    N2, C2 = 16, 4      # level-2 points / clusters
    H1, H2, F1 = 20, 10, 5   # SimpleRelativeEncoder(20, 10, 5)
    H3, F2 = 32, 25          # MiddleLayerEncoder(nb_feats_out=25)

    params1 = {
        "w1": 0.2 * jax.random.normal(ks[0], (3, H1), jnp.float32),
        "b1": 0.1 * jax.random.normal(ks[1], (1, H1), jnp.float32),
        "w2": 0.2 * jax.random.normal(ks[2], (H1, H2), jnp.float32),
        "b2": 0.1 * jax.random.normal(ks[3], (1, H2), jnp.float32),
        "w3": 0.2 * jax.random.normal(ks[4], (H2, F1), jnp.float32),
        "b3": 0.1 * jax.random.normal(ks[5], (1, F1), jnp.float32),
    }
    params2 = {
        "w1a": 0.2 * jax.random.normal(ks[6], (3, H3), jnp.float32),   # rows for relative coords
        "w1b": 0.2 * jax.random.normal(ks[7], (F1, H3), jnp.float32),  # rows for mapped feats1
        "b1":  0.1 * jax.random.normal(ks[8], (1, H3), jnp.float32),
        "w2":  0.2 * jax.random.normal(ks[9], (H3, F2), jnp.float32),
        "b2":  0.1 * jax.random.normal(ks[10], (1, F2), jnp.float32),
    }

    relative_neighs = jax.random.normal(ks[11], (N1, 3), jnp.float32)
    cluster = (jnp.arange(N1, dtype=jnp.int32) % C1)                   # every cluster non-empty
    relative_neighs2 = jax.random.normal(ks[12], (N2, 3), jnp.float32)
    indices2 = jax.random.randint(ks[13], (N2,), 0, C1, dtype=jnp.int32)
    cluster2 = (jnp.arange(N2, dtype=jnp.int32) % C2)

    ref_enc, ref_f2 = _ref_forward(relative_neighs, cluster, relative_neighs2,
                                   indices2, cluster2, params1, params2, C1, C2)

    # 1) default tiling (single tile, single core)
    encoding, feats2 = composed_encoder(relative_neighs, cluster, relative_neighs2,
                                        indices2, cluster2, params1, params2, C1, C2)
    encoding = jax.block_until_ready(encoding)
    feats2 = jax.block_until_ready(feats2)
    assert encoding.shape == (C2, F2) and feats2.shape == (N2, F2)
    assert bool(jnp.allclose(encoding, ref_enc, atol=1e-4, rtol=1e-4))
    assert bool(jnp.allclose(feats2, ref_f2, atol=1e-4, rtol=1e-4))

    # 2) tiny max_tile to exercise the multi-tile grid and the dual-core ("parallel") split path
    encoding_s, feats2_s = composed_encoder(relative_neighs, cluster, relative_neighs2,
                                            indices2, cluster2, params1, params2, C1, C2,
                                            max_tile=8)
    encoding_s = jax.block_until_ready(encoding_s)
    feats2_s = jax.block_until_ready(feats2_s)
    assert bool(jnp.allclose(encoding_s, ref_enc, atol=1e-4, rtol=1e-4))
    assert bool(jnp.allclose(feats2_s, ref_f2, atol=1e-4, rtol=1e-4))

    print("KERNEL_OK")
</pallas_src>

<mosaic_0001>
module attributes {stable_mosaic.version = 11 : i64} {
  func.func @_enc1_kernel(%arg0: i32, %arg1: i32, %arg2: memref<32x8xf32, #tpu.memory_space<vmem>>, %arg3: memref<32x1xi32, #tpu.memory_space<vmem>>, %arg4: memref<8x128xf32, #tpu.memory_space<vmem>>, %arg5: memref<1x128xf32, #tpu.memory_space<vmem>>, %arg6: memref<128x128xf32, #tpu.memory_space<vmem>>, %arg7: memref<1x128xf32, #tpu.memory_space<vmem>>, %arg8: memref<128x128xf32, #tpu.memory_space<vmem>>, %arg9: memref<1x128xf32, #tpu.memory_space<vmem>>, %arg10: memref<1x8x128xf32, #tpu.memory_space<vmem>>) attributes {dimension_semantics = [#tpu.dimension_semantics<parallel>, #tpu.dimension_semantics<arbitrary>], iteration_bounds = array<i64: 1, 1>, scalar_prefetch = 0 : i64, scratch_operands = 0 : i64, tpu.core_type = #tpu.core_type<tc>, window_params = [{transform_indices = @transform_0, window_bounds = array<i64: 32, 8>}, {transform_indices = @transform_1, window_bounds = array<i64: 32, 1>}, {pipeline_mode = #tpu.pipeline_mode<synchronous>, transform_indices = @transform_2, window_bounds = array<i64: 8, 128>}, {pipeline_mode = #tpu.pipeline_mode<synchronous>, transform_indices = @transform_3, window_bounds = array<i64: 1, 128>}, {pipeline_mode = #tpu.pipeline_mode<synchronous>, transform_indices = @transform_4, window_bounds = array<i64: 128, 128>}, {pipeline_mode = #tpu.pipeline_mode<synchronous>, transform_indices = @transform_5, window_bounds = array<i64: 1, 128>}, {pipeline_mode = #tpu.pipeline_mode<synchronous>, transform_indices = @transform_6, window_bounds = array<i64: 128, 128>}, {pipeline_mode = #tpu.pipeline_mode<synchronous>, transform_indices = @transform_7, window_bounds = array<i64: 1, 128>}, {transform_indices = @transform_8, window_bounds = array<i64: 1, 8, 128>}]} {
    %c0_i32 = arith.constant 0 : i32
    %0 = arith.cmpi eq, %arg1, %c0_i32 : i32
    %1 = arith.extui %0 : i1 to i32
    %c0_i32_0 = arith.constant 0 : i32
    %2 = arith.cmpi ne, %1, %c0_i32_0 : i32
    scf.if %2 {
      %cst_45 = arith.constant -1.000000e+30 : f32
      %95 = vector.broadcast %cst_45 : f32 to vector<8x128xf32>
      %c0_46 = arith.constant 0 : index
      %c0_47 = arith.constant 0 : index
      %c0_48 = arith.constant 0 : index
      %96 = vector.load %arg10[%c0_46, %c0_47, %c0_48] : memref<1x8x128xf32, #tpu.memory_space<vmem>>, vector<1x8x128xf32>
      %97 = vector.shape_cast %96 : vector<1x8x128xf32> to vector<8x128xf32>
      %98 = vector.shape_cast %95 : vector<8x128xf32> to vector<1x8x128xf32>
      tpu.vector_store %arg10[%c0_46, %c0_47, %c0_48], %98 {strides = array<i32>} : memref<1x8x128xf32, #tpu.memory_space<vmem>>, vector<1x8x128xf32>,
    } else {
    }
    %c0 = arith.constant 0 : index
    %c0_1 = arith.constant 0 : index
    %3 = vector.load %arg2[%c0, %c0_1] : memref<32x8xf32, #tpu.memory_space<vmem>>, vector<32x8xf32>
    %c0_2 = arith.constant 0 : index
    %c0_3 = arith.constant 0 : index
    %4 = vector.load %arg4[%c0_2, %c0_3] : memref<8x128xf32, #tpu.memory_space<vmem>>, vector<8x128xf32>
    %cst = arith.constant dense<0.000000e+00> : vector<32x128xf32>
    %5 = tpu.matmul %3, %4, %cst {dimension_numbers = #tpu.dot_dimension_numbers<[1], [0], [0], [1], [0, 0, 1, 1], [], []>} : vector<32x8xf32>, vector<8x128xf32>, vector<32x128xf32> -> vector<32x128xf32>
    %c0_4 = arith.constant 0 : index
    %c0_5 = arith.constant 0 : index
    %6 = vector.load %arg5[%c0_4, %c0_5] : memref<1x128xf32, #tpu.memory_space<vmem>>, vector<1x128xf32>
    %7 = vector.broadcast %6 : vector<1x128xf32> to vector<32x128xf32>
    %8 = arith.addf %5, %7 : vector<32x128xf32>
    %cst_6 = arith.constant 0.000000e+00 : f32
    %9 = vector.broadcast %cst_6 : f32 to vector<32x128xf32>
    %10 = arith.maximumf %8, %9 : vector<32x128xf32>
    %c0_7 = arith.constant 0 : index
    %c0_8 = arith.constant 0 : index
    %11 = vector.load %arg6[%c0_7, %c0_8] : memref<128x128xf32, #tpu.memory_space<vmem>>, vector<128x128xf32>
    %cst_9 = arith.constant dense<0.000000e+00> : vector<32x128xf32>
    %12 = tpu.matmul %10, %11, %cst_9 {dimension_numbers = #tpu.dot_dimension_numbers<[1], [0], [0], [1], [0, 0, 1, 1], [], []>} : vector<32x128xf32>, vector<128x128xf32>, vector<32x128xf32> -> vector<32x128xf32>
    %c0_10 = arith.constant 0 : index
    %c0_11 = arith.constant 0 : index
    %13 = vector.load %arg7[%c0_10, %c0_11] : memref<1x128xf32, #tpu.memory_space<vmem>>, vector<1x128xf32>
    %14 = vector.broadcast %13 : vector<1x128xf32> to vector<32x128xf32>
    %15 = arith.addf %12, %14 : vector<32x128xf32>
    %cst_12 = arith.constant 0.000000e+00 : f32
    %16 = vector.broadcast %cst_12 : f32 to vector<32x128xf32>
    %17 = arith.maximumf %15, %16 : vector<32x128xf32>
    %c0_13 = arith.constant 0 : index
    %c0_14 = arith.constant 0 : index
    %18 = vector.load %arg8[%c0_13, %c0_14] : memref<128x128xf32, #tpu.memory_space<vmem>>, vector<128x128xf32>
    %cst_15 = arith.constant dense<0.000000e+00> : vector<32x128xf32>
    %19 = tpu.matmul %17, %18, %cst_15 {dimension_numbers = #tpu.dot_dimension_numbers<[1], [0], [0], [1], [0, 0, 1, 1], [], []>} : vector<32x128xf32>, vector<128x128xf32>, vector<32x128xf32> -> vector<32x128xf32>
    %c0_16 = arith.constant 0 : index
    %c0_17 = arith.constant 0 : index
    %20 = vector.load %arg9[%c0_16, %c0_17] : memref<1x128xf32, #tpu.memory_space<vmem>>, vector<1x128xf32>
    %21 = vector.broadcast %20 : vector<1x128xf32> to vector<32x128xf32>
    %22 = arith.addf %19, %21 : vector<32x128xf32>
    %c0_18 = arith.constant 0 : index
    %c0_19 = arith.constant 0 : index
    %23 = vector.load %arg3[%c0_18, %c0_19] : memref<32x1xi32, #tpu.memory_space<vmem>>, vector<32x1xi32>
    %24 = vector.shape_cast %23 : vector<32x1xi32> to vector<32x1xi32>
    %25 = vector.broadcast %24 : vector<32x1xi32> to vector<32x128xi32>
    %c0_i32_20 = arith.constant 0 : i32
    %c1_i32 = arith.constant 1 : i32
    %26 = arith.muli %c0_i32_20, %c1_i32 : i32
    %c0_i32_21 = arith.constant 0 : i32
    %27 = arith.addi %c0_i32_21, %26 : i32
    %c8_i32 = arith.constant 8 : i32
    %28 = arith.muli %27, %c8_i32 : i32
    %29 = tpu.assume_multiple %28, 8 : i32
    %c0_i32_22 = arith.constant 0 : i32
    %30 = arith.addi %29, %c0_i32_22 : i32
    %31 = vector.broadcast %30 : i32 to vector<32x128xi32>
    %32 = arith.cmpi eq, %25, %31 : vector<32x128xi32>
    %cst_23 = arith.constant -1.000000e+30 : f32
    %33 = vector.broadcast %cst_23 : f32 to vector<32x128xf32>
    %34 = arith.select %32, %22, %33 : vector<32x128xi1>, vector<32x128xf32>
    %cst_24 = arith.constant dense<0xFF800000> : vector<128xf32>
    %35 = vector.multi_reduction <maximumf>, %34, %cst_24 [0] : vector<32x128xf32> to vector<128xf32>
    %36 = vector.shape_cast %35 : vector<128xf32> to vector<1x128xf32>
    %c1_i32_25 = arith.constant 1 : i32
    %37 = arith.addi %29, %c1_i32_25 : i32
    %38 = vector.broadcast %37 : i32 to vector<32x128xi32>
    %39 = arith.cmpi eq, %25, %38 : vector<32x128xi32>
    %cst_26 = arith.constant -1.000000e+30 : f32
    %40 = vector.broadcast %cst_26 : f32 to vector<32x128xf32>
    %41 = arith.select %39, %22, %40 : vector<32x128xi1>, vector<32x128xf32>
    %cst_27 = arith.constant dense<0xFF800000> : vector<128xf32>
    %42 = vector.multi_reduction <maximumf>, %41, %cst_27 [0] : vector<32x128xf32> to vector<128xf32>
    %43 = vector.shape_cast %42 : vector<128xf32> to vector<1x128xf32>
    %c2_i32 = arith.constant 2 : i32
    %44 = arith.addi %29, %c2_i32 : i32
    %45 = vector.broadcast %44 : i32 to vector<32x128xi32>
    %46 = arith.cmpi eq, %25, %45 : vector<32x128xi32>
    %cst_28 = arith.constant -1.000000e+30 : f32
    %47 = vector.broadcast %cst_28 : f32 to vector<32x128xf32>
    %48 = arith.select %46, %22, %47 : vector<32x128xi1>, vector<32x128xf32>
    %cst_29 = arith.constant dense<0xFF800000> : vector<128xf32>
    %49 = vector.multi_reduction <maximumf>, %48, %cst_29 [0] : vector<32x128xf32> to vector<128xf32>
    %50 = vector.shape_cast %49 : vector<128xf32> to vector<1x128xf32>
    %c3_i32 = arith.constant 3 : i32
    %51 = arith.addi %29, %c3_i32 : i32
    %52 = vector.broadcast %51 : i32 to vector<32x128xi32>
    %53 = arith.cmpi eq, %25, %52 : vector<32x128xi32>
    %cst_30 = arith.constant -1.000000e+30 : f32
    %54 = vector.broadcast %cst_30 : f32 to vector<32x128xf32>
    %55 = arith.select %53, %22, %54 : vector<32x128xi1>, vector<32x128xf32>
    %cst_31 = arith.constant dense<0xFF800000> : vector<128xf32>
    %56 = vector.multi_reduction <maximumf>, %55, %cst_31 [0] : vector<32x128xf32> to vector<128xf32>
    %57 = vector.shape_cast %56 : vector<128xf32> to vector<1x128xf32>
    %c4_i32 = arith.constant 4 : i32
    %58 = arith.addi %29, %c4_i32 : i32
    %59 = vector.broadcast %58 : i32 to vector<32x128xi32>
    %60 = arith.cmpi eq, %25, %59 : vector<32x128xi32>
    %cst_32 = arith.constant -1.000000e+30 : f32
    %61 = vector.broadcast %cst_32 : f32 to vector<32x128xf32>
    %62 = arith.select %60, %22, %61 : vector<32x128xi1>, vector<32x128xf32>
    %cst_33 = arith.constant dense<0xFF800000> : vector<128xf32>
    %63 = vector.multi_reduction <maximumf>, %62, %cst_33 [0] : vector<32x128xf32> to vector<128xf32>
    %64 = vector.shape_cast %63 : vector<128xf32> to vector<1x128xf32>
    %c5_i32 = arith.constant 5 : i32
    %65 = arith.addi %29, %c5_i32 : i32
    %66 = vector.broadcast %65 : i32 to vector<32x128xi32>
    %67 = arith.cmpi eq, %25, %66 : vector<32x128xi32>
    %cst_34 = arith.constant -1.000000e+30 : f32
    %68 = vector.broadcast %cst_34 : f32 to vector<32x128xf32>
    %69 = arith.select %67, %22, %68 : vector<32x128xi1>, vector<32x128xf32>
    %cst_35 = arith.constant dense<0xFF800000> : vector<128xf32>
    %70 = vector.multi_reduction <maximumf>, %69, %cst_35 [0] : vector<32x128xf32> to vector<128xf32>
    %71 = vector.shape_cast %70 : vector<128xf32> to vector<1x128xf32>
    %c6_i32 = arith.constant 6 : i32
    %72 = arith.addi %29, %c6_i32 : i32
    %73 = vector.broadcast %72 : i32 to vector<32x128xi32>
    %74 = arith.cmpi eq, %25, %73 : vector<32x128xi32>
    %cst_36 = arith.constant -1.000000e+30 : f32
    %75 = vector.broadcast %cst_36 : f32 to vector<32x128xf32>
    %76 = arith.select %74, %22, %75 : vector<32x128xi1>, vector<32x128xf32>
    %cst_37 = arith.constant dense<0xFF800000> : vector<128xf32>
    %77 = vector.multi_reduction <maximumf>, %76, %cst_37 [0] : vector<32x128xf32> to vector<128xf32>
    %78 = vector.shape_cast %77 : vector<128xf32> to vector<1x128xf32>
    %c7_i32 = arith.constant 7 : i32
    %79 = arith.addi %29, %c7_i32 : i32
    %80 = vector.broadcast %79 : i32 to vector<32x128xi32>
    %81 = arith.cmpi eq, %25, %80 : vector<32x128xi32>
    %cst_38 = arith.constant -1.000000e+30 : f32
    %82 = vector.broadcast %cst_38 : f32 to vector<32x128xf32>
    %83 = arith.select %81, %22, %82 : vector<32x128xi1>, vector<32x128xf32>
    %cst_39 = arith.constant dense<0xFF800000> : vector<128xf32>
    %84 = vector.multi_reduction <maximumf>, %83, %cst_39 [0] : vector<32x128xf32> to vector<128xf32>
    %85 = vector.shape_cast %84 : vector<128xf32> to vector<1x128xf32>
    %86 = tpu.concatenate %36, %43, %50, %57, %64, %71, %78, %85 in 0 : vector<1x128xf32>, vector<1x128xf32>, vector<1x128xf32>, vector<1x128xf32>, vector<1x128xf32>, vector<1x128xf32>, vector<1x128xf32>, vector<1x128xf32> -> vector<8x128xf32>
    %c0_40 = arith.constant 0 : index
    %87 = arith.index_cast %29 : i32 to index
    %c0_41 = arith.constant 0 : index
    %88 = vector.load %arg10[%c0_40, %87, %c0_41] : memref<1x8x128xf32, #tpu.memory_space<vmem>>, vector<1x8x128xf32>
    %89 = vector.shape_cast %88 : vector<1x8x128xf32> to vector<8x128xf32>
    %90 = arith.maximumf %89, %86 : vector<8x128xf32>
    %c0_42 = arith.constant 0 : index
    %91 = arith.index_cast %29 : i32 to index
    %c0_43 = arith.constant 0 : index
    %92 = vector.load %arg10[%c0_42, %91, %c0_43] : memref<1x8x128xf32, #tpu.memory_space<vmem>>, vector<1x8x128xf32>
    %93 = vector.shape_cast %92 : vector<1x8x128xf32> to vector<8x128xf32>
    %94 = vector.shape_cast %90 : vector<8x128xf32> to vector<1x8x128xf32>
    tpu.vector_store %arg10[%c0_42, %91, %c0_43], %94 {strides = array<i32>} : memref<1x8x128xf32, #tpu.memory_space<vmem>>, vector<1x8x128xf32>,
    %c1_i32_44 = arith.constant 1 : i32
    return
  }
  func.func @transform_0(%arg0: i32, %arg1: i32) -> (i32, i32) {
    %c1_i32 = arith.constant 1 : i32
    %0 = arith.muli %arg0, %c1_i32 : i32
    %1 = arith.addi %0, %arg1 : i32
    %c0_i32 = arith.constant 0 : i32
    %c0_i32_0 = arith.constant 0 : i32
    return %1, %c0_i32 : i32, i32
  }
  func.func @transform_1(%arg0: i32, %arg1: i32) -> (i32, i32) {
    %c1_i32 = arith.constant 1 : i32
    %0 = arith.muli %arg0, %c1_i32 : i32
    %1 = arith.addi %0, %arg1 : i32
    %c0_i32 = arith.constant 0 : i32
    %c0_i32_0 = arith.constant 0 : i32
    return %1, %c0_i32 : i32, i32
  }
  func.func @transform_2(%arg0: i32, %arg1: i32) -> (i32, i32) {
    %c0_i32 = arith.constant 0 : i32
    %c0_i32_0 = arith.constant 0 : i32
    %c0_i32_1 = arith.constant 0 : i32
    return %c0_i32, %c0_i32_0 : i32, i32
  }
  func.func @transform_3(%arg0: i32, %arg1: i32) -> (i32, i32) {
    %c0_i32 = arith.constant 0 : i32
    %c0_i32_0 = arith.constant 0 : i32
    %c0_i32_1 = arith.constant 0 : i32
    return %c0_i32, %c0_i32_0 : i32, i32
  }
  func.func @transform_4(%arg0: i32, %arg1: i32) -> (i32, i32) {
    %c0_i32 = arith.constant 0 : i32
    %c0_i32_0 = arith.constant 0 : i32
    %c0_i32_1 = arith.constant 0 : i32
    return %c0_i32, %c0_i32_0 : i32, i32
  }
  func.func @transform_5(%arg0: i32, %arg1: i32) -> (i32, i32) {
    %c0_i32 = arith.constant 0 : i32
    %c0_i32_0 = arith.constant 0 : i32
    %c0_i32_1 = arith.constant 0 : i32
    return %c0_i32, %c0_i32_0 : i32, i32
  }
  func.func @transform_6(%arg0: i32, %arg1: i32) -> (i32, i32) {
    %c0_i32 = arith.constant 0 : i32
    %c0_i32_0 = arith.constant 0 : i32
    %c0_i32_1 = arith.constant 0 : i32
    return %c0_i32, %c0_i32_0 : i32, i32
  }
  func.func @transform_7(%arg0: i32, %arg1: i32) -> (i32, i32) {
    %c0_i32 = arith.constant 0 : i32
    %c0_i32_0 = arith.constant 0 : i32
    %c0_i32_1 = arith.constant 0 : i32
    return %c0_i32, %c0_i32_0 : i32, i32
  }
  func.func @transform_8(%arg0: i32, %arg1: i32) -> (i32, i32, i32) {
    %c0_i32 = arith.constant 0 : i32
    %c0_i32_0 = arith.constant 0 : i32
    %c0_i32_1 = arith.constant 0 : i32
    return %arg0, %c0_i32, %c0_i32_0 : i32, i32, i32
  }
}

</mosaic_0001>

<bundles_post_ra>
// kernel: tpu_custom_call.1
= control target key start
LH: loop header
LB: loop body
LE: loop exit
PB: predicated region body
PF: predicated region fallthrough
CT: control target
= control target key end

     0   :  { %13 = vsyncpa [#allocation3], 0  ;;  %s1189_s0 = inlined_call_operand.vmem [shape: f32[32,8], index: 0, kind: input, shape index: {}]   ;;  %s1190_s1 = inlined_call_operand.vmem [shape: s32[32,1], index: 1, kind: input, shape index: {}]   ;;  %s1191_s2 = inlined_call_operand.vmem [shape: f32[8,128], index: 2, kind: input, shape index: {}]   ;;  %s1192_s3 = inlined_call_operand.vmem [shape: f32[1,128], index: 3, kind: input, shape index: {}]   ;;  %s1193_s4 = inlined_call_operand.hbm [shape: f32[128,128], index: 4, kind: input, shape index: {}]   ;;  %s1194_s5 = inlined_call_operand.vmem [shape: f32[1,128], index: 5, kind: input, shape index: {}]   ;;  %s1195_s6 = inlined_call_operand.hbm [shape: f32[128,128], index: 6, kind: input, shape index: {}]   ;;  %s1196_s7 = inlined_call_operand.vmem [shape: f32[1,128], index: 7, kind: input, shape index: {}]   ;;  %s1197_s8 = inlined_call_operand.hbm [shape: f32[1,8,128], index: 8, kind: output, shape index: {}]  }
   0x1   :  { %14 = vsyncpa [#allocation6], 0 }
   0x2   :  { %15 = vsyncpa [#allocation4], 0  ;;  %s934_s27 = smov [#allocation2]   ;;  %s862_s9 = scalar_lea.hbm %s1193_s4, 2048 }
   0x3   :  { %s45_s28 = sshll.u32 %s934_s27, 4  ;;  %p863_p0 = scmp.ne.s32.totalorder %s1193_s4, %s862_s9  ;;  %s46_s28 = int_to_ptr.vmem [resolvable:$true] %s45_s28 }
   0x4   :  { %p866_p1 = scmp.lt.u32.totalorder %s862_s9, %s1193_s4 }
   0x6   :  { %p868_p2 = pnand %p866_p1, %p863_p0 }
   0x8   :  { %871 = shalt.err (!%p868_p2)
}
   0x9   :  { %s872_s14 = scalar_lea.vmem %s46_s28, 2048  ;;  %p877_p4 = scmp.lt.s32.totalorder %s46_s28, %s46_s28 }
   0xa   :  { %p873_p3 = scmp.ne.s32.totalorder %s46_s28, %s872_s14  ;;  %p878_p5 = scmp.lt.s32.totalorder %s872_s14, %s872_s14 }
   0xc   :  { %p879_p6 = por %p878_p5, %p877_p4 }
   0xe   :  { %p880_p7 = pnand %p879_p6, %p873_p3 }
  0x10   :  { %883 = shalt.err (!%p880_p7)
}
  0x11   :  { %s935_s15 = smov 128   ;;  %s936_s16 = smov 8  }
  0x12   :  { %51 = dma.hbm_to_vmem [thread:$0]  %s1193_s4, 2048, %s46_s28, [#allocation3], %s935_s15, %s935_s15, %s936_s16  }
  0x13   :  { %s937_s19 = smov [#allocation5]   ;;  %s884_s23 = scalar_lea.hbm %s1195_s6, 2048 }
  0x14   :  { %s59_s20 = sshll.u32 %s937_s19, 4  ;;  %p885_p8 = scmp.ne.s32.totalorder %s1195_s6, %s884_s23  ;;  %s60_s20 = int_to_ptr.vmem [resolvable:$true] %s59_s20 }
  0x15   :  { %p888_p9 = scmp.lt.u32.totalorder %s884_s23, %s1195_s6 }
  0x17   :  { %p890_p10 = pnand %p888_p9, %p885_p8 }
  0x19   :  { %893 = shalt.err (!%p890_p10)
}
  0x1a   :  { %s894_s29 = scalar_lea.vmem %s60_s20, 2048  ;;  %p899_p12 = scmp.lt.s32.totalorder %s60_s20, %s60_s20 }
  0x1b   :  { %p895_p11 = scmp.ne.s32.totalorder %s60_s20, %s894_s29  ;;  %p900_p13 = scmp.lt.s32.totalorder %s894_s29, %s894_s29 }
  0x1d   :  { %p901_p0 = por %p900_p13, %p899_p12 }
  0x1f   :  { %p902_p1 = pnand %p901_p0, %p895_p11 }
  0x21   :  { %905 = shalt.err (!%p902_p1)
}
  0x22   :  { %65 = dma.hbm_to_vmem [thread:$0]  %s1195_s6, 2048, %s60_s20, [#allocation6], %s935_s15, %s935_s15, %s936_s16  }
  0x23   :  { %928 = dma.done.wait [#allocation3], 2048  }
  0x24   :  { %929 = vsyncadd [#allocation3], 4294965248 }
  0x25   :  { %930 = dma.done.wait [#allocation6], 2048  }
  0x26   :  { %931 = vsyncadd [#allocation6], 4294965248  ;;  %vm119_vm0 = vcmask 64512   ;;  %v111_v0 = vld [vmem:[%s1191_s2] sm:$0xff]  ;;  %v108_v2 = vld [vmem:[%s1189_s0 + $0x8] sm:$0xff] }
  0x27   :  { %v107_v1 = vld [vmem:[%s1189_s0] sm:$0xff]  ;;  %705 = vmatprep.subr.mxu0 %v111_v0  ;;  %v109_v3 = vld [vmem:[%s1189_s0 + $0x10] sm:$0xff]  ;;  %v222_v5 = vld [vmem:[#allocation2 + $0x8] sm:$0xff] }
  0x28   :  { %707 = vmatprep.mubr.msk.f32.mxu0 %vm119_vm0, %v107_v1  ;;  %v221_v4 = vld [vmem:[#allocation2] sm:$0xff]  ;;  %706 = vmatpush3.msra.mxu0 %v111_v0  ;;  %v223_v6 = vld [vmem:[#allocation2 + $0x10] sm:$0xff]  ;;  %v224_v7 = vld [vmem:[#allocation2 + $0x18] sm:$0xff] }
  0x29   :  { %708 = vmatmul.mubr.msk.f32.vlgmr.msra.gmra.mrb[0].mxu0 %vm119_vm0, %v108_v2  ;;  %v789_v8 = vpack.c.bf16 %v222_v5, %v221_v4  ;;  %v793_v9 = vpack.c.bf16 %v224_v7, %v223_v6  ;;  %v110_v10 = vld [vmem:[%s1189_s0 + $0x18] sm:$0xff]  ;;  %v225_v11 = vld [vmem:[#allocation2 + $0x20] sm:$0xff]  ;;  %v226_v12 = vld [vmem:[#allocation2 + $0x28] sm:$0xff]  ;;  %v938_v4 = vmov 0  }
  0x2a   :  { %710 = vmatprep.mubr.msk.f32.mxu0 %vm119_vm0, %v109_v3  ;;  %v797_v13 = vpack.c.bf16 %v226_v12, %v225_v11  ;;  %v227_v14 = vld [vmem:[#allocation2 + $0x30] sm:$0xff]  ;;  %v228_v15 = vld [vmem:[#allocation2 + $0x38] sm:$0xff]  ;;  %v229_v17 = vld [vmem:[#allocation2 + $0x40] sm:$0xff]  ;;  %860 = vset.pattern.permute.xlu0 %v938_v4 }
  0x2b   :  { %790 = vmatprep.subr.bf16.mxu1 %v789_v8  ;;  %v801_v16 = vpack.c.bf16 %v228_v15, %v227_v14  ;;  %v230_v18 = vld [vmem:[#allocation2 + $0x48] sm:$0xff]  ;;  %v231_v20 = vld [vmem:[#allocation2 + $0x50] sm:$0xff]  ;;  %v232_v21 = vld [vmem:[#allocation2 + $0x58] sm:$0xff]  ;;  %861 = vset.pattern.permute.xlu1 %v938_v4 }
  0x2c   :  { %792 = vmatpush3.bf16.msra.mxu1 %v789_v8  ;;  %v805_v19 = vpack.c.bf16 %v230_v18, %v229_v17  ;;  %v809_v22 = vpack.c.bf16 %v232_v21, %v231_v20  ;;  %v233_v23 = vld [vmem:[#allocation2 + $0x60] sm:$0xff]  ;;  %v234_v24 = vld [vmem:[#allocation2 + $0x68] sm:$0xff]  ;;  %v235_v26 = vld [vmem:[#allocation2 + $0x70] sm:$0xff] }
  0x2d   :  { %711 = vmatmul.mubr.msk.f32.gmra.mrb[2].mxu0 %vm119_vm0, %v110_v10  ;;  %794 = vmatprep.subr.bf16.mxu1 %v793_v9  ;;  %v813_v25 = vpack.c.bf16 %v234_v24, %v233_v23  ;;  %v236_v27 = vld [vmem:[#allocation2 + $0x78] sm:$0xff]  ;;  %v333_v29 = vld [vmem:[#allocation5] sm:$0xff]  ;;  %v334_v30 = vld [vmem:[#allocation5 + $0x8] sm:$0xff] }
  0x2e   :  { %v817_v28 = vpack.c.bf16 %v236_v27, %v235_v26  ;;  %v335_v31 = vld [vmem:[#allocation5 + $0x10] sm:$0xff]  ;;  %v821_v32 = vpack.c.bf16 %v334_v30, %v333_v29  ;;  %v336_v33 = vld [vmem:[#allocation5 + $0x18] sm:$0xff]  ;;  %v337_v35 = vld [vmem:[#allocation5 + $0x20] sm:$0xff] }
  0x2f   :  { %v825_v34 = vpack.c.bf16 %v336_v33, %v335_v31  ;;  %v338_v36 = vld [vmem:[#allocation5 + $0x28] sm:$0xff]  ;;  %v339_v38 = vld [vmem:[#allocation5 + $0x30] sm:$0xff]  ;;  %v340_v39 = vld [vmem:[#allocation5 + $0x38] sm:$0xff] }
  0x30   :  { %796 = vmatpush3.bf16.msra.mxu1 %v793_v9  ;;  %822 = vmatprep.subr.bf16.mxu0 %v821_v32  ;;  %v829_v37 = vpack.c.bf16 %v338_v36, %v337_v35  ;;  %v833_v40 = vpack.c.bf16 %v340_v39, %v339_v38  ;;  %v341_v41 = vld [vmem:[#allocation5 + $0x40] sm:$0xff]  ;;  %v342_v42 = vld [vmem:[#allocation5 + $0x48] sm:$0xff]  ;;  %v343_v44 = vld [vmem:[#allocation5 + $0x50] sm:$0xff] }
  0x31   :  { %798 = vmatprep.subr.bf16.mxu1 %v797_v13  ;;  %824 = vmatpush3.bf16.msra.mxu0 %v821_v32  ;;  %v837_v43 = vpack.c.bf16 %v342_v42, %v341_v41  ;;  %v344_v45 = vld [vmem:[#allocation5 + $0x58] sm:$0xff]  ;;  %v345_v47 = vld [vmem:[#allocation5 + $0x60] sm:$0xff]  ;;  %v346_v48 = vld [vmem:[#allocation5 + $0x68] sm:$0xff] }
  0x32   :  { %826 = vmatprep.subr.bf16.mxu0 %v825_v34  ;;  %v841_v46 = vpack.c.bf16 %v344_v45, %v343_v44  ;;  %v845_v49 = vpack.c.bf16 %v346_v48, %v345_v47  ;;  %v653_v50 = vld [vmem:[%s1192_s3] ss:$0 sm:$0xff]  ;;  %v347_v63 = vld [vmem:[#allocation5 + $0x70] sm:$0xff]  ;;  %v348_v0 = vld [vmem:[#allocation5 + $0x78] sm:$0xff] }
  0x33   :  { %v849_v1 = vpack.c.bf16 %v348_v0, %v347_v63  ;;  %v441_v2 = vld [vmem:[%s1190_s1] sm:$0xff]  ;;  %v443_v3 = vld [vmem:[%s1190_s1 + $0x10] sm:$0xff]  ;;  %v442_v5 = vld [vmem:[%s1190_s1 + $0x8] sm:$0xff] }
  0x34   :  { %800 = vmatpush3.bf16.msra.mxu1 %v797_v13  ;;  %446 = vperm.xlu0 %860, %v441_v2   ;;  %v444_v6 = vld [vmem:[%s1190_s1 + $0x18] sm:$0xff]  ;;  %v658_v7 = vld [vmem:[%s1194_s5] ss:$0 sm:$0xff] }
  0x35   :  { %802 = vmatprep.subr.bf16.mxu1 %v801_v16  ;;  %828 = vmatpush3.bf16.msra.mxu0 %v825_v34  ;;  %v659_v23 = vld [vmem:[%s1196_s7] ss:$0 sm:$0xff]  ;;  %s939_s7 = smov [#allocation7]  }
  0x36   :  { %830 = vmatprep.subr.bf16.mxu0 %v829_v37  ;;  %452 = vperm.xlu1 %861, %v443_v3   ;;  %s631_s26 = sshll.u32 %s939_s7, 4  ;;  %s632_s26 = int_to_ptr.vmem [resolvable:$true] %s631_s26 }
  0x37   :  { %s906_s27 = scalar_lea.vmem %s632_s26, 128  ;;  %p911_p3 = scmp.lt.s32.totalorder %s632_s26, %s632_s26 }
  0x38   :  { %804 = vmatpush3.bf16.msra.mxu1 %v801_v16  ;;  %449 = vperm.xlu0 %860, %v442_v5   ;;  %p907_p2 = scmp.ne.s32.totalorder %s632_s26, %s906_s27  ;;  %p912_p4 = scmp.lt.s32.totalorder %s906_s27, %s906_s27 }
  0x39   :  { %806 = vmatprep.subr.bf16.mxu1 %v805_v19  ;;  %832 = vmatpush3.bf16.msra.mxu0 %v829_v37 }
  0x3a   :  { %834 = vmatprep.subr.bf16.mxu0 %v833_v40  ;;  %455 = vperm.xlu1 %861, %v444_v6   ;;  %p913_p5 = por %p912_p4, %p911_p3 }
  0x3c   :  { %808 = vmatpush3.bf16.msra.mxu1 %v805_v19  ;;  %p914_p6 = pnand %p913_p5, %p907_p2 }
  0x3d   :  { %810 = vmatprep.subr.bf16.mxu1 %v809_v22  ;;  %836 = vmatpush3.bf16.msra.mxu0 %v833_v40 }
  0x3e   :  { %838 = vmatprep.subr.bf16.mxu0 %v837_v43 }
  0x40   :  { %812 = vmatpush3.bf16.msra.mxu1 %v809_v22 }
  0x41   :  { %814 = vmatprep.subr.bf16.mxu1 %v813_v25  ;;  %840 = vmatpush3.bf16.msra.mxu0 %v837_v43 }
  0x42   :  { %842 = vmatprep.subr.bf16.mxu0 %v841_v46 }
  0x44   :  { %816 = vmatpush3.bf16.msra.mxu1 %v813_v25 }
  0x45   :  { %818 = vmatprep.subr.bf16.mxu1 %v817_v28  ;;  %844 = vmatpush3.bf16.msra.mxu0 %v841_v46 }
  0x46   :  { %846 = vmatprep.subr.bf16.mxu0 %v845_v49 }
  0x48   :  { %820 = vmatpush3.bf16.msra.mxu1 %v817_v28 }
  0x49   :  { %848 = vmatpush3.bf16.msra.mxu0 %v845_v49 }
  0x4a   :  { %850 = vmatprep.subr.bf16.mxu0 %v849_v1 }
  0x4d   :  { %852 = vmatpush3.bf16.msra.mxu0 %v849_v1 }
  0xb3   :  { %v1046_v20 = vpop.permute.xlu0 %446 }
  0xb4   :  { %vm458_vm1 = vcmp.eq.s32.totalorder %v1046_v20, 0 }
  0xb5   :  { %v1048_v21 = vpop.permute.xlu1 %452 }
  0xb6   :  { %vm536_vm13 = vcmp.eq.s32.totalorder %v1048_v21, 4  ;;  %vm555_vm12 = vcmp.eq.s32.totalorder %v1048_v21, 5 }
  0xb7   :  { %v450_v22 = vpop.permute.xlu0 %449 }
  0xb8   :  { %vm459_vm7 = vcmp.eq.s32.totalorder %v450_v22, 0  ;;  %vm478_vm8 = vcmp.eq.s32.totalorder %v450_v22, 1  ;;  %vm497_vm9 = vcmp.eq.s32.totalorder %v450_v22, 2  ;;  %vm516_vm10 = vcmp.eq.s32.totalorder %v450_v22, 3 }
  0xb9   :  { %v1059_v24 = vpop.permute.xlu1 %455  ;;  %vm535_vm11 = vcmp.eq.s32.totalorder %v450_v22, 4  ;;  %vm554_vm15 = vcmp.eq.s32.totalorder %v450_v22, 5  ;;  %vm573_vm0 = vcmp.eq.s32.totalorder %v450_v22, 6  ;;  %vm592_vm5 = vcmp.eq.s32.totalorder %v450_v22, 7 }
  0xba   :  { %vm461_vm4 = vcmp.eq.s32.totalorder %v1059_v24, 0  ;;  %vm480_vm3 = vcmp.eq.s32.totalorder %v1059_v24, 1  ;;  %vm499_vm2 = vcmp.eq.s32.totalorder %v1059_v24, 2  ;;  %vm518_vm6 = vcmp.eq.s32.totalorder %v1059_v24, 3 }
  0xbb   :  { %vm537_vm14 = vcmp.eq.s32.totalorder %v1059_v24, 4 }
  0xfc   :  { %v709_v51 = vpop.f32.mrb[0].mxu0 }
  0xfd   :  { %v204_v52 = vadd.f32 %v709_v51, %v653_v50  ;;  %v198_v53 = vpop.f32.mrb[1].mxu0 }
  0xfe   :  { %v199_v54 = vadd.f32 %v653_v50, %v198_v53 }
  0xff   :  { %v218_v57 = vmax.f32 %v204_v52, 0.0 }
 0x100   :  { %v712_v55 = vpop.f32.mrb[2].mxu0  ;;  %v217_v56 = vmax.f32 %v199_v54, 0.0 }
 0x101   :  { %v214_v58 = vadd.f32 %v712_v55, %v653_v50  ;;  %v208_v59 = vpop.f32.mrb[3].mxu0 }
 0x102   :  { %v209_v60 = vadd.f32 %v653_v50, %v208_v59  ;;  %745 = vmatprep.mubr.f32.mxu1 %v217_v56 }
 0x103   :  { %746 = vmatmul.mubr.f32.vlgmr.msra.gmra.mrb[0].mxu1 %v218_v57  ;;  %v220_v62 = vmax.f32 %v214_v58, 0.0 }
 0x104   :  { %v219_v61 = vmax.f32 %v209_v60, 0.0 }
 0x106   :  { %748 = vmatprep.mubr.f32.mxu1 %v219_v61 }
 0x107   :  { %749 = vmatmul.mubr.f32.gmra.mrb[2].mxu1 %v220_v62 }
 0x1d6   :  { %v747_v8 = vpop.f32.mrb[0].mxu1 }
 0x1d7   :  { %v316_v9 = vadd.f32 %v747_v8, %v658_v7  ;;  %v310_v10 = vpop.f32.mrb[1].mxu1 }
 0x1d8   :  { %v311_v11 = vadd.f32 %v658_v7, %v310_v10 }
 0x1d9   :  { %v330_v14 = vmax.f32 %v316_v9, 0.0 }
 0x1da   :  { %v329_v12 = vmax.f32 %v311_v11, 0.0  ;;  %v750_v13 = vpop.f32.mrb[2].mxu1 }
 0x1db   :  { %v326_v15 = vadd.f32 %v750_v13, %v658_v7  ;;  %v320_v16 = vpop.f32.mrb[3].mxu1 }
 0x1dc   :  { %v321_v17 = vadd.f32 %v658_v7, %v320_v16  ;;  %783 = vmatprep.mubr.f32.mxu0 %v329_v12 }
 0x1dd   :  { %784 = vmatmul.mubr.f32.vlgmr.msra.gmra.mrb[4].mxu0 %v330_v14  ;;  %v332_v19 = vmax.f32 %v326_v15, 0.0 }
 0x1de   :  { %v331_v18 = vmax.f32 %v321_v17, 0.0 }
 0x1e0   :  { %786 = vmatprep.mubr.f32.mxu0 %v331_v18 }
 0x1e1   :  { %787 = vmatmul.mubr.f32.gmra.mrb[6].mxu0 %v332_v19 }
 0x2b0   :  { %v785_v25 = vpop.f32.mrb[4].mxu0 }
 0x2b1   :  { %v428_v26 = vadd.f32 %v785_v25, %v659_v23  ;;  %v422_v27 = vpop.f32.mrb[5].mxu0 }
 0x2b2   :  { %v1065_v28 = vadd.f32 %v659_v23, %v422_v27 }
 0x2b3   :  { %v463_v29 = vsel %vm459_vm7, %v428_v26, -1e+30  ;;  %v482_v30 = vsel %vm478_vm8, %v428_v26, -1e+30  ;;  %v501_v31 = vsel %vm497_vm9, %v428_v26, -1e+30 }
 0x2b4   :  { %v520_v32 = vsel %vm516_vm10, %v428_v26, -1e+30  ;;  %v539_v33 = vsel %vm535_vm11, %v428_v26, -1e+30  ;;  %v1080_v34 = vsel %vm554_vm15, %v428_v26, -1e+30 }
 0x2b5   :  { %v1084_v35 = vsel %vm573_vm0, %v428_v26, -1e+30  ;;  %v1087_v36 = vsel %vm592_vm5, %v428_v26, -1e+30  ;;  %v462_v37 = vsel %vm458_vm1, %v1065_v28, -1e+30 }
 0x2b6   :  { %v466_v38 = vmax.f32 %v462_v37, %v463_v29  ;;  %vm1198_vm7 = vcmp.eq.s32.totalorder %v1046_v20, 1  ;;  %vm556_vm8 = vcmp.eq.s32.totalorder %v1059_v24, 5  ;;  %v788_v40 = vpop.f32.mrb[6].mxu0  ;;  %vm1199_vm9 = vcmp.eq.s32.totalorder %v1046_v20, 2 }
 0x2b7   :  { %v481_v39 = vsel %vm1198_vm7, %v1065_v28, -1e+30  ;;  %v500_v41 = vsel %vm1199_vm9, %v1065_v28, -1e+30  ;;  %vm574_vm10 = vcmp.eq.s32.totalorder %v1048_v21, 6  ;;  %vm575_vm5 = vcmp.eq.s32.totalorder %v1059_v24, 6 }
 0x2b8   :  { %v485_v42 = vmax.f32 %v481_v39, %v482_v30  ;;  %v1101_v43 = vadd.f32 %v788_v40, %v659_v23  ;;  %v432_v44 = vpop.f32.mrb[7].mxu0  ;;  %v504_v45 = vmax.f32 %v500_v41, %v501_v31  ;;  %vm1200_vm1 = vcmp.eq.s32.totalorder %v1046_v20, 3 }
 0x2b9   :  { %v519_v46 = vsel %vm1200_vm1, %v1065_v28, -1e+30  ;;  %v1106_v47 = vadd.f32 %v659_v23, %v432_v44  ;;  %vm1201_vm11 = vcmp.eq.s32.totalorder %v1046_v20, 4  ;;  %vm1202_vm15 = vcmp.eq.s32.totalorder %v1046_v20, 5 }
 0x2ba   :  { %v523_v48 = vmax.f32 %v519_v46, %v520_v32  ;;  %v538_v49 = vsel %vm1201_vm11, %v1065_v28, -1e+30  ;;  %v557_v50 = vsel %vm1202_vm15, %v1065_v28, -1e+30  ;;  %vm591_vm0 = vcmp.eq.s32.totalorder %v1046_v20, 7 }
 0x2bb   :  { %v465_v51 = vsel %vm461_vm4, %v1101_v43, -1e+30  ;;  %v484_v52 = vsel %vm480_vm3, %v1101_v43, -1e+30  ;;  %v503_v53 = vsel %vm499_vm2, %v1101_v43, -1e+30  ;;  %v542_v54 = vmax.f32 %v538_v49, %v539_v33 }
 0x2bc   :  { %vm1203_vm7 = vcmp.eq.s32.totalorder %v1048_v21, 0  ;;  %vm1204_vm9 = vcmp.eq.s32.totalorder %v1048_v21, 1  ;;  %vm1205_vm4 = vcmp.eq.s32.totalorder %v1048_v21, 2  ;;  %v561_v58 = vmax.f32 %v557_v50, %v1080_v34 }
 0x2bd   :  { %v464_v55 = vsel %vm1203_vm7, %v1106_v47, -1e+30  ;;  %v483_v56 = vsel %vm1204_vm9, %v1106_v47, -1e+30  ;;  %v502_v57 = vsel %vm1205_vm4, %v1106_v47, -1e+30 }
 0x2be   :  { %v467_v59 = vmax.f32 %v464_v55, %v465_v51  ;;  %v486_v60 = vmax.f32 %v483_v56, %v484_v52  ;;  %v505_v61 = vmax.f32 %v502_v57, %v503_v53  ;;  %vm1206_vm2 = vcmp.eq.s32.totalorder %v1048_v21, 3 }
 0x2bf   :  { %v521_v62 = vsel %vm1206_vm2, %v1106_v47, -1e+30  ;;  %v522_v63 = vsel %vm518_vm6, %v1101_v43, -1e+30  ;;  %v540_v0 = vsel %vm536_vm13, %v1106_v47, -1e+30 }
 0x2c0   :  { %v541_v1 = vsel %vm537_vm14, %v1101_v43, -1e+30  ;;  %vm593_vm3 = vcmp.eq.s32.totalorder %v1048_v21, 7  ;;  %v468_v2 = vmax.f32 %v466_v38, %v467_v59  ;;  %v487_v3 = vmax.f32 %v485_v42, %v486_v60 }
 0x2c1   :  { %v506_v4 = vmax.f32 %v504_v45, %v505_v61  ;;  %v524_v5 = vmax.f32 %v521_v62, %v522_v63  ;;  %v543_v6 = vmax.f32 %v540_v0, %v541_v1  ;;  %v559_v7 = vsel %vm555_vm12, %v1106_v47, -1e+30 }
 0x2c2   :  { %v560_v8 = vsel %vm556_vm8, %v1101_v43, -1e+30  ;;  %vm1207_vm6 = vcmp.eq.s32.totalorder %v1046_v20, 6  ;;  %vm594_vm13 = vcmp.eq.s32.totalorder %v1059_v24, 7  ;;  %v469_v10 = vrot.slane %v468_v2, 4 }
 0x2c3   :  { %v576_v9 = vsel %vm1207_vm6, %v1065_v28, -1e+30  ;;  %v488_v11 = vrot.slane %v487_v3, 4  ;;  %v507_v12 = vrot.slane %v506_v4, 4  ;;  %v525_v13 = vmax.f32 %v523_v48, %v524_v5 }
 0x2c4   :  { %v544_v14 = vmax.f32 %v542_v54, %v543_v6  ;;  %v562_v15 = vmax.f32 %v559_v7, %v560_v8  ;;  %v578_v16 = vsel %vm574_vm10, %v1106_v47, -1e+30  ;;  %v579_v17 = vsel %vm575_vm5, %v1101_v43, -1e+30 }
 0x2c5   :  { %vm608_vm12 = vcmask 1040384   ;;  %v470_v18 = vmax.f32 %v468_v2, %v469_v10  ;;  %v489_v19 = vmax.f32 %v487_v3, %v488_v11  ;;  %v508_v22 = vmax.f32 %v506_v4, %v507_v12 }
 0x2c6   :  { %v526_v23 = vrot.slane %v525_v13, 4  ;;  %vm610_vm14 = vcmask 1041408   ;;  %v545_v25 = vrot.slane %v544_v14, 4  ;;  %v563_v26 = vmax.f32 %v561_v58, %v562_v15 }
 0x2c7   :  { %v580_v27 = vmax.f32 %v576_v9, %v1084_v35  ;;  %v581_v29 = vmax.f32 %v578_v16, %v579_v17  ;;  %vm612_vm8 = vcmask 1042432   ;;  %v471_v30 = vrot.slane %v470_v18, 2 }
 0x2c8   :  { %v490_v31 = vrot.slane %v489_v19, 2  ;;  %v509_v32 = vrot.slane %v508_v22, 2  ;;  %v527_v33 = vmax.f32 %v525_v13, %v526_v23  ;;  %v546_v34 = vmax.f32 %v544_v14, %v545_v25 }
 0x2c9   :  { %v564_v37 = vrot.slane %v563_v26, 4  ;;  %v582_v38 = vmax.f32 %v580_v27, %v581_v29  ;;  %v595_v39 = vsel %vm591_vm0, %v1065_v28, -1e+30  ;;  %v472_v40 = vmax.f32 %v470_v18, %v471_v30 }
 0x2ca   :  { %v491_v41 = vmax.f32 %v489_v19, %v490_v31  ;;  %v510_v42 = vmax.f32 %v508_v22, %v509_v32  ;;  %v528_v44 = vrot.slane %v527_v33, 2  ;;  %v547_v45 = vrot.slane %v546_v34, 2 }
 0x2cb   :  { %v565_v46 = vmax.f32 %v563_v26, %v564_v37  ;;  %v583_v35 = vrot.slane %v582_v38, 4  ;;  %v597_v48 = vsel %vm593_vm3, %v1106_v47, -1e+30  ;;  %v473_v49 = vrot.slane %v472_v40, 1 }
 0x2cc   :  { %v492_v50 = vrot.slane %v491_v41, 1  ;;  %v511_v51 = vrot.slane %v510_v42, 1  ;;  %v529_v52 = vmax.f32 %v527_v33, %v528_v44  ;;  %v548_v53 = vmax.f32 %v546_v34, %v547_v45 }
 0x2cd   :  { %v566_v54 = vrot.slane %v565_v46, 2  ;;  %v584_v55 = vmax.f32 %v582_v38, %v583_v35  ;;  %v598_v20 = vsel %vm594_vm13, %v1101_v43, -1e+30  ;;  %v474_v28 = vmax.f32 %v472_v40, %v473_v49 }
 0x2ce   :  { %v493_v56 = vmax.f32 %v491_v41, %v492_v50  ;;  %v512_v57 = vmax.f32 %v510_v42, %v511_v51  ;;  %v530_v58 = vrot.slane %v529_v52, 1  ;;  %v549_v59 = vrot.slane %v548_v53, 1 }
 0x2cf   :  { %v567_v60 = vmax.f32 %v565_v46, %v566_v54  ;;  %v585_v61 = vrot.slane %v584_v55, 2  ;;  %v599_v21 = vmax.f32 %v595_v39, %v1087_v36  ;;  %v600_v62 = vmax.f32 %v597_v48, %v598_v20 }
 0x2d0   :  { %v531_v47 = vmax.f32 %v529_v52, %v530_v58  ;;  %v609_v63 = vsel %vm608_vm12, %v474_v28, %v493_v56  ;;  %vm614_vm10 = vcmask 1043456   ;;  %v550_v0 = vmax.f32 %v548_v53, %v549_v59 }
 0x2d1   :  { %v568_v1 = vrot.slane %v567_v60, 1  ;;  %v586_v2 = vmax.f32 %v584_v55, %v585_v61  ;;  %v611_v24 = vsel %vm610_vm14, %v609_v63, %v512_v57  ;;  %v601_v43 = vmax.f32 %v599_v21, %v600_v62 }
 0x2d2   :  { %v613_v3 = vsel %vm612_vm8, %v611_v24, %v531_v47  ;;  %vm616_vm5 = vcmask 1044480   ;;  %vm618_vm1 = vcmask 1045504   ;;  %vm620_vm11 = vcmask 1046528  }
 0x2d3   :  { %v569_v4 = vmax.f32 %v567_v60, %v568_v1  ;;  %v587_v5 = vrot.slane %v586_v2, 1  ;;  %v615_v6 = vsel %vm614_vm10, %v613_v3, %v550_v0  ;;  %v602_v7 = vrot.slane %v601_v43, 4 }
 0x2d5   :  { %v588_v36 = vmax.f32 %v586_v2, %v587_v5  ;;  %v617_v8 = vsel %vm616_vm5, %v615_v6, %v569_v4  ;;  %v603_v9 = vmax.f32 %v601_v43, %v602_v7 }
 0x2d7   :  { %v619_v10 = vsel %vm618_vm1, %v617_v8, %v588_v36  ;;  %v604_v11 = vrot.slane %v603_v9, 2 }
 0x2d9   :  { %v605_v12 = vmax.f32 %v603_v9, %v604_v11 }
 0x2db   :  { %v606_v13 = vrot.slane %v605_v12, 1 }
 0x2dd   :  { %v607_v14 = vmax.f32 %v605_v12, %v606_v13 }
 0x2df   :  { %v621_v15 = vsel %vm620_vm11, %v619_v10, %v607_v14 }
 0x2e0   :  { %v623_v16 = vmax.f32 %v621_v15, -1e+30 }
 0x2e2   :  { %624 = vst [vmem:[#allocation7] sm:$0xff] %v623_v16 }
 0x2e3   :  { %917 = shalt.err (!%p914_p6)
}
 0x2e4   :  { %s918_s28 = scalar_lea.hbm %s1197_s8, 128 }
 0x2e5   :  { %p919_p7 = scmp.ne.s32.totalorder %s1197_s8, %s918_s28  ;;  %p922_p8 = scmp.lt.u32.totalorder %s918_s28, %s1197_s8 }
 0x2e7   :  { %p924_p9 = pnand %p922_p8, %p919_p7 }
 0x2e9   :  { %927 = shalt.err (!%p924_p9)
}
 0x2ea   :  { %634 = dma.vmem_to_hbm [thread:$0]  %s632_s26, 128, %s1197_s8, [#allocation4]  }
 0x2eb   :  { %932 = dma.done.wait [#allocation4], 128  }
 0x2ec   :  { %933 = vsyncadd [#allocation4], 4294967168 }
 0x2ed   :  { %638 = vsyncpa [#allocation3], 1 }
 0x2ee   :  { %639 = vsyncpa [#allocation6], 1 }
 0x2ef   :  { %640 = vsyncpa [#allocation4], 1 }

</bundles_post_ra>
